<compile_context>
chip_gen: v5e
topology: v5e:2x2
jax: 0.10.0
libtpu: 0.0.40
codegen_flags: <defaults>
</compile_context>

<pallas_src>
import functools

import jax
import jax.numpy as jnp
from jax import lax
from jax.experimental import pallas as pl
from jax.experimental.pallas import tpu as pltpu


def _gelu(x):
    # BERT gelu (tanh approximation), same as the repo's `gelu` helper.
    return 0.5 * x * (1.0 + jnp.tanh(0.7978845608028654 * (x + 0.044715 * x * x * x)))


def _layer_norm(t, gamma, beta, eps=1e-12):
    u = jnp.mean(t, axis=-1, keepdims=True)
    s = jnp.mean((t - u) ** 2, axis=-1, keepdims=True)
    return gamma * (t - u) * lax.rsqrt(s + eps) + beta


def encoder_kernel(x_ref, mask_ref,
                   wqkv_ref, bqkv_ref, wo_ref, bo_ref,
                   g1_ref, be1_ref, w1_ref, b1_ref,
                   w2_ref, b2_ref, g2_ref, be2_ref,
                   out_ref, *attn_refs, heads):
    S, D = x_ref.shape
    tq = out_ref.shape[0]
    dk = D // heads
    bf = jnp.bfloat16

    qi = pl.program_id(1)
    q_start = pl.multiple_of(qi * tq, tq)
    x_rows = x_ref[pl.ds(q_start, tq), :].astype(jnp.float32)    # [tq, D] query rows

    # ---- multi-head self-attention (Attention.forward) ----
    # NOTE: per the reference, `out = x + attention(x)` is immediately
    # overwritten by `out = norm1(x)`, so the attention result never feeds the
    # returned tensor; it is only computed/written when the caller asks for it.
    if attn_refs:
        attn_ref = attn_refs[0]
        x_kv = x_ref[...].astype(jnp.float32)                    # [S, D] full sequence
        mask = mask_ref[...].astype(jnp.float32)                 # [1, S]
        mask_bias = -10000.0 * (1.0 - mask)                      # hoisted out of head loop

        # Fused projections: Q from the query rows, K|V fused into one [D, 2D]
        # contraction over the full sequence; bf16 operands, f32 accumulation.
        wq, wkv = wqkv_ref[:, :D], wqkv_ref[:, D:]               # bf16 [D,D], [D,2D]
        bq, bkv = bqkv_ref[:, :D], bqkv_ref[:, D:]               # f32  [1,D], [1,2D]
        q = jnp.dot(x_rows.astype(bf), wq, preferred_element_type=jnp.float32) + bq
        kv = jnp.dot(x_kv.astype(bf), wkv, preferred_element_type=jnp.float32) + bkv
        qb = q.astype(bf)
        k = kv[:, :D].astype(bf)
        v = kv[:, D:].astype(bf)
        wo = wo_ref[...]                                         # bf16 [D, D]

        inv_sqrt_dk = 1.0 / (float(dk) ** 0.5)
        # Output-projection bias folded into the accumulator init; per-head
        # partial output projections avoid the lane-misaligned concat of heads.
        attn_acc = jnp.broadcast_to(bo_ref[...], (tq, D)).astype(jnp.float32)
        for h in range(heads):                                   # static unroll
            sl = slice(h * dk, (h + 1) * dk)
            s = lax.dot_general(qb[:, sl], k[:, sl], (((1,), (1,)), ((), ())),
                                preferred_element_type=jnp.float32) * inv_sqrt_dk
            s = s + mask_bias                                    # mask along key axis (f32)
            s = s - jnp.max(s, axis=-1, keepdims=True)
            p = jnp.exp(s)
            p = p * pl.reciprocal(jnp.sum(p, axis=-1, keepdims=True), approx=True)
            # TODO(synk): nn.Dropout(0.1) on attention probs is identity (eval mode).
            ctx = jnp.dot(p.astype(bf), v[:, sl], preferred_element_type=jnp.float32)
            attn_acc = attn_acc + jnp.dot(ctx.astype(bf), wo[sl, :],
                                          preferred_element_type=jnp.float32)
        attn_ref[...] = attn_acc.astype(attn_ref.dtype)

    # ---- Encoder.forward (row-wise on the query tile) ----
    out = _layer_norm(x_rows, g1_ref[...], be1_ref[...])
    f = out
    h1 = jnp.dot(out.astype(bf), w1_ref[...], preferred_element_type=jnp.float32) + b1_ref[...]
    h1 = _gelu(h1)
    h2 = jnp.dot(h1.astype(bf), w2_ref[...], preferred_element_type=jnp.float32) + b2_ref[...]
    # TODO(synk): Encoder's dropout layer is never applied in the reference forward.
    out = _layer_norm(h2 + f, g2_ref[...], be2_ref[...])
    out_ref[...] = out.astype(out_ref.dtype)


def encoder_forward(x, mask, params, heads, *, return_attn=False, q_tile=None):
    B, S, D = x.shape
    assert D % heads == 0, "hidden dim must divide evenly across heads"
    dk = D // heads
    assert dk % 8 == 0, "per-head dim must be a multiple of 8 (sublane alignment)"

    if q_tile is None:
        q_tile = S if S <= 256 else 128
    assert S % q_tile == 0, "sequence length must be a multiple of the query tile"
    # TODO(synk): ragged / non-multiple sequence lengths need a masked tail tile.
    n_q = S // q_tile

    bf, f32 = jnp.bfloat16, jnp.float32
    # Host-side QKV fusion + bf16 weight cast (halves weight DMA / VMEM).
    w_qkv = jnp.concatenate([params["wq"], params["wk"], params["wv"]], axis=1).astype(bf)
    b_qkv = jnp.concatenate([params["bq"], params["bk"], params["bv"]], axis=1).astype(f32)
    plist = [
        w_qkv, b_qkv,
        params["wo"].astype(bf), params["bo"].astype(f32),
        params["g1"].astype(f32), params["be1"].astype(f32),
        params["w1"].astype(bf), params["b1"].astype(f32),
        params["w2"].astype(bf), params["b2"].astype(f32),
        params["g2"].astype(f32), params["be2"].astype(f32),
    ]
    mask3 = mask.astype(f32).reshape(B, 1, S)

    in_specs = [
        pl.BlockSpec((None, S, D), lambda b, qi: (b, 0, 0)),   # x: full seq, resident per batch
        pl.BlockSpec((None, 1, S), lambda b, qi: (b, 0, 0)),   # mask
    ]
    # Parameters are 2-D, passed whole; constant index map -> fetched once.
    in_specs += [pl.BlockSpec(p.shape, lambda b, qi: (0, 0)) for p in plist]

    out_spec = pl.BlockSpec((None, q_tile, D), lambda b, qi: (b, qi, 0))
    if return_attn:
        out_specs = (out_spec, out_spec)
        out_shape = (jax.ShapeDtypeStruct((B, S, D), x.dtype),
                     jax.ShapeDtypeStruct((B, S, D), x.dtype))
    else:
        # Attention never feeds the returned tensor in the reference; skip its
        # HBM writeback (and compute) unless explicitly requested.
        out_specs = out_spec
        out_shape = jax.ShapeDtypeStruct((B, S, D), x.dtype)

    # Scoped-VMEM budget: weights + resident activations, double-buffered, with
    # headroom; clamped to [32 MiB, 64 MiB] so it is valid on v5e/v6e/v7x.
    param_bytes = sum(int(p.size) * p.dtype.itemsize for p in plist)
    act_bytes = 4 * (S * D + S * 2 * D + q_tile * (8 * D + S))
    vmem_limit = int(min(64 << 20, max(32 << 20, 4 * (param_bytes + act_bytes) + (1 << 20))))

    return pl.pallas_call(
        functools.partial(encoder_kernel, heads=heads),
        grid=(B, n_q),
        in_specs=in_specs,
        out_specs=out_specs,
        out_shape=out_shape,
        compiler_params=pltpu.CompilerParams(
            dimension_semantics=("parallel", "parallel"),
            vmem_limit_bytes=vmem_limit),
    )(x, mask3, *plist)


def init_params(key, dim):
    ks = jax.random.split(key, 10)

    def lin(k, din, dout):
        kw, kb = jax.random.split(k)
        return (0.02 * jax.random.normal(kw, (din, dout), jnp.float32),
                0.02 * jax.random.normal(kb, (1, dout), jnp.float32))

    wq, bq = lin(ks[0], dim, dim)
    wk, bk = lin(ks[1], dim, dim)
    wv, bv = lin(ks[2], dim, dim)
    wo, bo = lin(ks[3], dim, dim)
    w1, b1 = lin(ks[4], dim, 4 * dim)
    w2, b2 = lin(ks[5], 4 * dim, dim)
    g1 = 1.0 + 0.1 * jax.random.normal(ks[6], (1, dim), jnp.float32)
    be1 = 0.1 * jax.random.normal(ks[7], (1, dim), jnp.float32)
    g2 = 1.0 + 0.1 * jax.random.normal(ks[8], (1, dim), jnp.float32)
    be2 = 0.1 * jax.random.normal(ks[9], (1, dim), jnp.float32)
    return dict(wq=wq, bq=bq, wk=wk, bk=bk, wv=wv, bv=bv, wo=wo, bo=bo,
                g1=g1, be1=be1, w1=w1, b1=b1, w2=w2, b2=b2, g2=g2, be2=be2)


def ref_encoder(x, mask, p, heads, mxu_dtype=jnp.float32):
    """Pure-JAX replica of the PyTorch Encoder.forward (eval mode).

    With mxu_dtype=bfloat16 it mirrors the kernel's mixed-precision policy
    (bf16 matmul operands, f32 accumulation / softmax / gelu / layernorm)."""
    B, S, D = x.shape
    dk = D // heads
    cast = lambda t: t.astype(mxu_dtype)

    def linear(t, w, b):
        return jnp.dot(cast(t), cast(w), preferred_element_type=jnp.float32) + b

    q = linear(x, p["wq"], p["bq"]).reshape(B, S, heads, dk).transpose(0, 2, 1, 3)
    k = linear(x, p["wk"], p["bk"]).reshape(B, S, heads, dk).transpose(0, 2, 1, 3)
    v = linear(x, p["wv"], p["bv"]).reshape(B, S, heads, dk).transpose(0, 2, 1, 3)
    scores = jnp.einsum("bhqd,bhkd->bhqk", cast(q), cast(k),
                        preferred_element_type=jnp.float32) / jnp.sqrt(jnp.float32(dk))
    m = mask.astype(jnp.float32)[:, None, None, :]
    scores = scores - 10000.0 * (1.0 - m)
    probs = jax.nn.softmax(scores, axis=-1)
    ctx = jnp.einsum("bhqk,bhkd->bhqd", cast(probs), cast(v),
                     preferred_element_type=jnp.float32)
    ctx = ctx.transpose(0, 2, 1, 3).reshape(B, S, D)
    attn = linear(ctx, p["wo"], p["bo"])

    def ln(t, g, b, eps=1e-12):
        u = t.mean(-1, keepdims=True)
        s = ((t - u) ** 2).mean(-1, keepdims=True)
        return g * (t - u) / jnp.sqrt(s + eps) + b

    out = ln(x, p["g1"], p["be1"])
    f = out
    h = linear(_gelu(linear(out, p["w1"], p["b1"])), p["w2"], p["b2"])
    out = ln(h + f, p["g2"], p["be2"])
    return out, attn


if __name__ == "__main__":
    B, S, D, H = 2, 8, 32, 4
    key = jax.random.PRNGKey(0)
    kx, kp = jax.random.split(key)
    x = jax.random.normal(kx, (B, S, D), jnp.float32)
    # batch 0: full attention; batch 1: last 3 key positions masked out.
    mask = jnp.array([[1.0] * S, [1.0] * 5 + [0.0] * 3], dtype=jnp.float32)
    params = init_params(kp, D)

    # Validation path: also emit the (dead w.r.t. `out`) attention tensor.
    out, attn = encoder_forward(x, mask, params, H, return_attn=True)
    out = jax.block_until_ready(out)
    attn = jax.block_until_ready(attn)

    # Fast path (no attention writeback) must agree on `out`.
    out_fast = jax.block_until_ready(encoder_forward(x, mask, params, H))
    assert jnp.allclose(out, out_fast, atol=1e-6, rtol=1e-6), "fast path mismatch"

    # Tight check against a reference that mirrors the kernel's bf16-MXU policy.
    ref_out_bf, ref_attn_bf = ref_encoder(x, mask, params, H, mxu_dtype=jnp.bfloat16)
    assert jnp.allclose(out, ref_out_bf, atol=2e-3, rtol=2e-3), "encoder output mismatch (bf16 ref)"
    assert jnp.allclose(attn, ref_attn_bf, atol=2e-3, rtol=2e-2), "attention mismatch (bf16 ref)"

    # Loose sanity check against the full-f32 PyTorch-equivalent math.
    ref_out, ref_attn = ref_encoder(x, mask, params, H, mxu_dtype=jnp.float32)
    assert jnp.allclose(out, ref_out, atol=1e-2, rtol=1e-2), "encoder output mismatch (f32 ref)"
    assert jnp.allclose(attn, ref_attn, atol=1e-2, rtol=1e-2), "attention mismatch (f32 ref)"
    print("KERNEL_OK")
</pallas_src>

<mosaic_0001>
module attributes {stable_mosaic.version = 11 : i64} {
  func.func @encoder_kernel(%arg0: i32, %arg1: i32, %arg2: memref<1x8x32xf32, #tpu.memory_space<vmem>>, %arg3: memref<1x1x8xf32, #tpu.memory_space<vmem>>, %arg4: memref<32x96xbf16, #tpu.memory_space<vmem>>, %arg5: memref<1x96xf32, #tpu.memory_space<vmem>>, %arg6: memref<32x32xbf16, #tpu.memory_space<vmem>>, %arg7: memref<1x32xf32, #tpu.memory_space<vmem>>, %arg8: memref<1x32xf32, #tpu.memory_space<vmem>>, %arg9: memref<1x32xf32, #tpu.memory_space<vmem>>, %arg10: memref<32x128xbf16, #tpu.memory_space<vmem>>, %arg11: memref<1x128xf32, #tpu.memory_space<vmem>>, %arg12: memref<128x32xbf16, #tpu.memory_space<vmem>>, %arg13: memref<1x32xf32, #tpu.memory_space<vmem>>, %arg14: memref<1x32xf32, #tpu.memory_space<vmem>>, %arg15: memref<1x32xf32, #tpu.memory_space<vmem>>, %arg16: memref<1x8x32xf32, #tpu.memory_space<vmem>>, %arg17: memref<1x8x32xf32, #tpu.memory_space<vmem>>) attributes {dimension_semantics = [#tpu.dimension_semantics<parallel>, #tpu.dimension_semantics<parallel>], iteration_bounds = array<i64: 2, 1>, scalar_prefetch = 0 : i64, scratch_operands = 0 : i64, tpu.core_type = #tpu.core_type<tc>, window_params = [{transform_indices = @transform_0, window_bounds = array<i64: 1, 8, 32>}, {transform_indices = @transform_1, window_bounds = array<i64: 1, 1, 8>}, {pipeline_mode = #tpu.pipeline_mode<synchronous>, transform_indices = @transform_2, window_bounds = array<i64: 32, 96>}, {pipeline_mode = #tpu.pipeline_mode<synchronous>, transform_indices = @transform_3, window_bounds = array<i64: 1, 96>}, {pipeline_mode = #tpu.pipeline_mode<synchronous>, transform_indices = @transform_4, window_bounds = array<i64: 32, 32>}, {pipeline_mode = #tpu.pipeline_mode<synchronous>, transform_indices = @transform_5, window_bounds = array<i64: 1, 32>}, {pipeline_mode = #tpu.pipeline_mode<synchronous>, transform_indices = @transform_6, window_bounds = array<i64: 1, 32>}, {pipeline_mode = #tpu.pipeline_mode<synchronous>, transform_indices = @transform_7, window_bounds = array<i64: 1, 32>}, {pipeline_mode = #tpu.pipeline_mode<synchronous>, transform_indices = @transform_8, window_bounds = array<i64: 32, 128>}, {pipeline_mode = #tpu.pipeline_mode<synchronous>, transform_indices = @transform_9, window_bounds = array<i64: 1, 128>}, {pipeline_mode = #tpu.pipeline_mode<synchronous>, transform_indices = @transform_10, window_bounds = array<i64: 128, 32>}, {pipeline_mode = #tpu.pipeline_mode<synchronous>, transform_indices = @transform_11, window_bounds = array<i64: 1, 32>}, {pipeline_mode = #tpu.pipeline_mode<synchronous>, transform_indices = @transform_12, window_bounds = array<i64: 1, 32>}, {pipeline_mode = #tpu.pipeline_mode<synchronous>, transform_indices = @transform_13, window_bounds = array<i64: 1, 32>}, {transform_indices = @transform_14, window_bounds = array<i64: 1, 8, 32>}, {transform_indices = @transform_15, window_bounds = array<i64: 1, 8, 32>}]} {
    %c8_i32 = arith.constant 8 : i32
    %0 = arith.muli %arg1, %c8_i32 : i32
    %1 = tpu.assume_multiple %0, 8 : i32
    %c0 = arith.constant 0 : index
    %2 = arith.index_cast %1 : i32 to index
    %c0_0 = arith.constant 0 : index
    %3 = vector.load %arg2[%c0, %2, %c0_0] : memref<1x8x32xf32, #tpu.memory_space<vmem>>, vector<1x8x32xf32>
    %4 = vector.shape_cast %3 : vector<1x8x32xf32> to vector<8x32xf32>
    %c0_1 = arith.constant 0 : index
    %c0_2 = arith.constant 0 : index
    %c0_3 = arith.constant 0 : index
    %5 = vector.load %arg2[%c0_1, %c0_2, %c0_3] : memref<1x8x32xf32, #tpu.memory_space<vmem>>, vector<1x8x32xf32>
    %6 = vector.shape_cast %5 : vector<1x8x32xf32> to vector<8x32xf32>
    %c0_4 = arith.constant 0 : index
    %c0_5 = arith.constant 0 : index
    %c0_6 = arith.constant 0 : index
    %7 = vector.load %arg3[%c0_4, %c0_5, %c0_6] : memref<1x1x8xf32, #tpu.memory_space<vmem>>, vector<1x1x8xf32>
    %8 = vector.shape_cast %7 : vector<1x1x8xf32> to vector<1x8xf32>
    %cst = arith.constant 1.000000e+00 : f32
    %9 = vector.broadcast %cst : f32 to vector<1x8xf32>
    %10 = arith.subf %9, %8 : vector<1x8xf32>
    %cst_7 = arith.constant -1.000000e+04 : f32
    %11 = vector.broadcast %cst_7 : f32 to vector<1x8xf32>
    %12 = arith.mulf %11, %10 : vector<1x8xf32>
    %c0_8 = arith.constant 0 : index
    %c0_9 = arith.constant 0 : index
    %13 = vector.load %arg4[%c0_8, %c0_9] : memref<32x96xbf16, #tpu.memory_space<vmem>>, vector<32x32xbf16>
    %c0_10 = arith.constant 0 : index
    %c32 = arith.constant 32 : index
    %14 = vector.load %arg4[%c0_10, %c32] : memref<32x96xbf16, #tpu.memory_space<vmem>>, vector<32x64xbf16>
    %c0_11 = arith.constant 0 : index
    %c0_12 = arith.constant 0 : index
    %15 = vector.load %arg5[%c0_11, %c0_12] : memref<1x96xf32, #tpu.memory_space<vmem>>, vector<1x32xf32>
    %c0_13 = arith.constant 0 : index
    %c32_14 = arith.constant 32 : index
    %16 = vector.load %arg5[%c0_13, %c32_14] : memref<1x96xf32, #tpu.memory_space<vmem>>, vector<1x64xf32>
    %17 = arith.truncf %4 : vector<8x32xf32> to vector<8x32xbf16>
    %cst_15 = arith.constant dense<0.000000e+00> : vector<8x32xf32>
    %18 = tpu.matmul %17, %13, %cst_15 {dimension_numbers = #tpu.dot_dimension_numbers<[1], [0], [0], [1], [0, 0, 1, 1], [], []>} : vector<8x32xbf16>, vector<32x32xbf16>, vector<8x32xf32> -> vector<8x32xf32>
    %19 = vector.broadcast %15 : vector<1x32xf32> to vector<8x32xf32>
    %20 = arith.addf %18, %19 : vector<8x32xf32>
    %21 = arith.truncf %6 : vector<8x32xf32> to vector<8x32xbf16>
    %cst_16 = arith.constant dense<0.000000e+00> : vector<8x64xf32>
    %22 = tpu.matmul %21, %14, %cst_16 {dimension_numbers = #tpu.dot_dimension_numbers<[1], [0], [0], [1], [0, 0, 1, 1], [], []>} : vector<8x32xbf16>, vector<32x64xbf16>, vector<8x64xf32> -> vector<8x64xf32>
    %23 = vector.broadcast %16 : vector<1x64xf32> to vector<8x64xf32>
    %24 = arith.addf %22, %23 : vector<8x64xf32>
    %25 = arith.truncf %20 : vector<8x32xf32> to vector<8x32xbf16>
    %26 = vector.extract_strided_slice %24 {offsets = [0, 0], sizes = [8, 32], strides = [1, 1]} : vector<8x64xf32> to vector<8x32xf32>
    %27 = arith.truncf %26 : vector<8x32xf32> to vector<8x32xbf16>
    %28 = vector.extract_strided_slice %24 {offsets = [0, 32], sizes = [8, 32], strides = [1, 1]} : vector<8x64xf32> to vector<8x32xf32>
    %29 = arith.truncf %28 : vector<8x32xf32> to vector<8x32xbf16>
    %c0_17 = arith.constant 0 : index
    %c0_18 = arith.constant 0 : index
    %30 = vector.load %arg6[%c0_17, %c0_18] : memref<32x32xbf16, #tpu.memory_space<vmem>>, vector<32x32xbf16>
    %c0_19 = arith.constant 0 : index
    %c0_20 = arith.constant 0 : index
    %31 = vector.load %arg7[%c0_19, %c0_20] : memref<1x32xf32, #tpu.memory_space<vmem>>, vector<1x32xf32>
    %32 = vector.shape_cast %31 : vector<1x32xf32> to vector<1x32xf32>
    %33 = vector.broadcast %32 : vector<1x32xf32> to vector<8x32xf32>
    %34 = vector.extract_strided_slice %25 {offsets = [0, 0], sizes = [8, 8], strides = [1, 1]} : vector<8x32xbf16> to vector<8x8xbf16>
    %35 = vector.extract_strided_slice %27 {offsets = [0, 0], sizes = [8, 8], strides = [1, 1]} : vector<8x32xbf16> to vector<8x8xbf16>
    %cst_21 = arith.constant dense<0.000000e+00> : vector<8x8xf32>
    %36 = tpu.matmul %34, %35, %cst_21 {dimension_numbers = #tpu.dot_dimension_numbers<[1], [1], [0], [0], [0, 0, 1, 0], [], []>} : vector<8x8xbf16>, vector<8x8xbf16>, vector<8x8xf32> -> vector<8x8xf32>
    %cst_22 = arith.constant 0.353553385 : f32
    %37 = vector.broadcast %cst_22 : f32 to vector<8x8xf32>
    %38 = arith.mulf %36, %37 : vector<8x8xf32>
    %39 = vector.broadcast %12 : vector<1x8xf32> to vector<8x8xf32>
    %40 = arith.addf %38, %39 : vector<8x8xf32>
    %cst_23 = arith.constant dense<0xFF800000> : vector<8xf32>
    %41 = vector.multi_reduction <maximumf>, %40, %cst_23 [1] : vector<8x8xf32> to vector<8xf32>
    %42 = vector.shape_cast %41 : vector<8xf32> to vector<8x1xf32>
    %43 = vector.broadcast %42 : vector<8x1xf32> to vector<8x8xf32>
    %44 = arith.subf %40, %43 : vector<8x8xf32>
    %45 = math.exp %44 : vector<8x8xf32>
    %cst_24 = arith.constant dense<0.000000e+00> : vector<8xf32>
    %46 = vector.multi_reduction <add>, %45, %cst_24 [1] : vector<8x8xf32> to vector<8xf32>
    %47 = vector.shape_cast %46 : vector<8xf32> to vector<8x1xf32>
    %48 = tpu.reciprocal %47 {approx = true} : vector<8x1xf32> -> vector<8x1xf32>
    %49 = vector.broadcast %48 : vector<8x1xf32> to vector<8x8xf32>
    %50 = arith.mulf %45, %49 : vector<8x8xf32>
    %51 = arith.truncf %50 : vector<8x8xf32> to vector<8x8xbf16>
    %52 = vector.extract_strided_slice %29 {offsets = [0, 0], sizes = [8, 8], strides = [1, 1]} : vector<8x32xbf16> to vector<8x8xbf16>
    %cst_25 = arith.constant dense<0.000000e+00> : vector<8x8xf32>
    %53 = tpu.matmul %51, %52, %cst_25 {dimension_numbers = #tpu.dot_dimension_numbers<[1], [0], [0], [1], [0, 0, 1, 1], [], []>} : vector<8x8xbf16>, vector<8x8xbf16>, vector<8x8xf32> -> vector<8x8xf32>
    %54 = arith.truncf %53 : vector<8x8xf32> to vector<8x8xbf16>
    %55 = vector.extract_strided_slice %30 {offsets = [0, 0], sizes = [8, 32], strides = [1, 1]} : vector<32x32xbf16> to vector<8x32xbf16>
    %cst_26 = arith.constant dense<0.000000e+00> : vector<8x32xf32>
    %56 = tpu.matmul %54, %55, %cst_26 {dimension_numbers = #tpu.dot_dimension_numbers<[1], [0], [0], [1], [0, 0, 1, 1], [], []>} : vector<8x8xbf16>, vector<8x32xbf16>, vector<8x32xf32> -> vector<8x32xf32>
    %57 = arith.addf %33, %56 : vector<8x32xf32>
    %58 = vector.extract_strided_slice %25 {offsets = [0, 8], sizes = [8, 8], strides = [1, 1]} : vector<8x32xbf16> to vector<8x8xbf16>
    %59 = vector.extract_strided_slice %27 {offsets = [0, 8], sizes = [8, 8], strides = [1, 1]} : vector<8x32xbf16> to vector<8x8xbf16>
    %cst_27 = arith.constant dense<0.000000e+00> : vector<8x8xf32>
    %60 = tpu.matmul %58, %59, %cst_27 {dimension_numbers = #tpu.dot_dimension_numbers<[1], [1], [0], [0], [0, 0, 1, 0], [], []>} : vector<8x8xbf16>, vector<8x8xbf16>, vector<8x8xf32> -> vector<8x8xf32>
    %cst_28 = arith.constant 0.353553385 : f32
    %61 = vector.broadcast %cst_28 : f32 to vector<8x8xf32>
    %62 = arith.mulf %60, %61 : vector<8x8xf32>
    %63 = vector.broadcast %12 : vector<1x8xf32> to vector<8x8xf32>
    %64 = arith.addf %62, %63 : vector<8x8xf32>
    %cst_29 = arith.constant dense<0xFF800000> : vector<8xf32>
    %65 = vector.multi_reduction <maximumf>, %64, %cst_29 [1] : vector<8x8xf32> to vector<8xf32>
    %66 = vector.shape_cast %65 : vector<8xf32> to vector<8x1xf32>
    %67 = vector.broadcast %66 : vector<8x1xf32> to vector<8x8xf32>
    %68 = arith.subf %64, %67 : vector<8x8xf32>
    %69 = math.exp %68 : vector<8x8xf32>
    %cst_30 = arith.constant dense<0.000000e+00> : vector<8xf32>
    %70 = vector.multi_reduction <add>, %69, %cst_30 [1] : vector<8x8xf32> to vector<8xf32>
    %71 = vector.shape_cast %70 : vector<8xf32> to vector<8x1xf32>
    %72 = tpu.reciprocal %71 {approx = true} : vector<8x1xf32> -> vector<8x1xf32>
    %73 = vector.broadcast %72 : vector<8x1xf32> to vector<8x8xf32>
    %74 = arith.mulf %69, %73 : vector<8x8xf32>
    %75 = arith.truncf %74 : vector<8x8xf32> to vector<8x8xbf16>
    %76 = vector.extract_strided_slice %29 {offsets = [0, 8], sizes = [8, 8], strides = [1, 1]} : vector<8x32xbf16> to vector<8x8xbf16>
    %cst_31 = arith.constant dense<0.000000e+00> : vector<8x8xf32>
    %77 = tpu.matmul %75, %76, %cst_31 {dimension_numbers = #tpu.dot_dimension_numbers<[1], [0], [0], [1], [0, 0, 1, 1], [], []>} : vector<8x8xbf16>, vector<8x8xbf16>, vector<8x8xf32> -> vector<8x8xf32>
    %78 = arith.truncf %77 : vector<8x8xf32> to vector<8x8xbf16>
    %79 = vector.extract_strided_slice %30 {offsets = [8, 0], sizes = [8, 32], strides = [1, 1]} : vector<32x32xbf16> to vector<8x32xbf16>
    %cst_32 = arith.constant dense<0.000000e+00> : vector<8x32xf32>
    %80 = tpu.matmul %78, %79, %cst_32 {dimension_numbers = #tpu.dot_dimension_numbers<[1], [0], [0], [1], [0, 0, 1, 1], [], []>} : vector<8x8xbf16>, vector<8x32xbf16>, vector<8x32xf32> -> vector<8x32xf32>
    %81 = arith.addf %57, %80 : vector<8x32xf32>
    %82 = vector.extract_strided_slice %25 {offsets = [0, 16], sizes = [8, 8], strides = [1, 1]} : vector<8x32xbf16> to vector<8x8xbf16>
    %83 = vector.extract_strided_slice %27 {offsets = [0, 16], sizes = [8, 8], strides = [1, 1]} : vector<8x32xbf16> to vector<8x8xbf16>
    %cst_33 = arith.constant dense<0.000000e+00> : vector<8x8xf32>
    %84 = tpu.matmul %82, %83, %cst_33 {dimension_numbers = #tpu.dot_dimension_numbers<[1], [1], [0], [0], [0, 0, 1, 0], [], []>} : vector<8x8xbf16>, vector<8x8xbf16>, vector<8x8xf32> -> vector<8x8xf32>
    %cst_34 = arith.constant 0.353553385 : f32
    %85 = vector.broadcast %cst_34 : f32 to vector<8x8xf32>
    %86 = arith.mulf %84, %85 : vector<8x8xf32>
    %87 = vector.broadcast %12 : vector<1x8xf32> to vector<8x8xf32>
    %88 = arith.addf %86, %87 : vector<8x8xf32>
    %cst_35 = arith.constant dense<0xFF800000> : vector<8xf32>
    %89 = vector.multi_reduction <maximumf>, %88, %cst_35 [1] : vector<8x8xf32> to vector<8xf32>
    %90 = vector.shape_cast %89 : vector<8xf32> to vector<8x1xf32>
    %91 = vector.broadcast %90 : vector<8x1xf32> to vector<8x8xf32>
    %92 = arith.subf %88, %91 : vector<8x8xf32>
    %93 = math.exp %92 : vector<8x8xf32>
    %cst_36 = arith.constant dense<0.000000e+00> : vector<8xf32>
    %94 = vector.multi_reduction <add>, %93, %cst_36 [1] : vector<8x8xf32> to vector<8xf32>
    %95 = vector.shape_cast %94 : vector<8xf32> to vector<8x1xf32>
    %96 = tpu.reciprocal %95 {approx = true} : vector<8x1xf32> -> vector<8x1xf32>
    %97 = vector.broadcast %96 : vector<8x1xf32> to vector<8x8xf32>
    %98 = arith.mulf %93, %97 : vector<8x8xf32>
    %99 = arith.truncf %98 : vector<8x8xf32> to vector<8x8xbf16>
    %100 = vector.extract_strided_slice %29 {offsets = [0, 16], sizes = [8, 8], strides = [1, 1]} : vector<8x32xbf16> to vector<8x8xbf16>
    %cst_37 = arith.constant dense<0.000000e+00> : vector<8x8xf32>
    %101 = tpu.matmul %99, %100, %cst_37 {dimension_numbers = #tpu.dot_dimension_numbers<[1], [0], [0], [1], [0, 0, 1, 1], [], []>} : vector<8x8xbf16>, vector<8x8xbf16>, vector<8x8xf32> -> vector<8x8xf32>
    %102 = arith.truncf %101 : vector<8x8xf32> to vector<8x8xbf16>
    %103 = vector.extract_strided_slice %30 {offsets = [16, 0], sizes = [8, 32], strides = [1, 1]} : vector<32x32xbf16> to vector<8x32xbf16>
    %cst_38 = arith.constant dense<0.000000e+00> : vector<8x32xf32>
    %104 = tpu.matmul %102, %103, %cst_38 {dimension_numbers = #tpu.dot_dimension_numbers<[1], [0], [0], [1], [0, 0, 1, 1], [], []>} : vector<8x8xbf16>, vector<8x32xbf16>, vector<8x32xf32> -> vector<8x32xf32>
    %105 = arith.addf %81, %104 : vector<8x32xf32>
    %106 = vector.extract_strided_slice %25 {offsets = [0, 24], sizes = [8, 8], strides = [1, 1]} : vector<8x32xbf16> to vector<8x8xbf16>
    %107 = vector.extract_strided_slice %27 {offsets = [0, 24], sizes = [8, 8], strides = [1, 1]} : vector<8x32xbf16> to vector<8x8xbf16>
    %cst_39 = arith.constant dense<0.000000e+00> : vector<8x8xf32>
    %108 = tpu.matmul %106, %107, %cst_39 {dimension_numbers = #tpu.dot_dimension_numbers<[1], [1], [0], [0], [0, 0, 1, 0], [], []>} : vector<8x8xbf16>, vector<8x8xbf16>, vector<8x8xf32> -> vector<8x8xf32>
    %cst_40 = arith.constant 0.353553385 : f32
    %109 = vector.broadcast %cst_40 : f32 to vector<8x8xf32>
    %110 = arith.mulf %108, %109 : vector<8x8xf32>
    %111 = vector.broadcast %12 : vector<1x8xf32> to vector<8x8xf32>
    %112 = arith.addf %110, %111 : vector<8x8xf32>
    %cst_41 = arith.constant dense<0xFF800000> : vector<8xf32>
    %113 = vector.multi_reduction <maximumf>, %112, %cst_41 [1] : vector<8x8xf32> to vector<8xf32>
    %114 = vector.shape_cast %113 : vector<8xf32> to vector<8x1xf32>
    %115 = vector.broadcast %114 : vector<8x1xf32> to vector<8x8xf32>
    %116 = arith.subf %112, %115 : vector<8x8xf32>
    %117 = math.exp %116 : vector<8x8xf32>
    %cst_42 = arith.constant dense<0.000000e+00> : vector<8xf32>
    %118 = vector.multi_reduction <add>, %117, %cst_42 [1] : vector<8x8xf32> to vector<8xf32>
    %119 = vector.shape_cast %118 : vector<8xf32> to vector<8x1xf32>
    %120 = tpu.reciprocal %119 {approx = true} : vector<8x1xf32> -> vector<8x1xf32>
    %121 = vector.broadcast %120 : vector<8x1xf32> to vector<8x8xf32>
    %122 = arith.mulf %117, %121 : vector<8x8xf32>
    %123 = arith.truncf %122 : vector<8x8xf32> to vector<8x8xbf16>
    %124 = vector.extract_strided_slice %29 {offsets = [0, 24], sizes = [8, 8], strides = [1, 1]} : vector<8x32xbf16> to vector<8x8xbf16>
    %cst_43 = arith.constant dense<0.000000e+00> : vector<8x8xf32>
    %125 = tpu.matmul %123, %124, %cst_43 {dimension_numbers = #tpu.dot_dimension_numbers<[1], [0], [0], [1], [0, 0, 1, 1], [], []>} : vector<8x8xbf16>, vector<8x8xbf16>, vector<8x8xf32> -> vector<8x8xf32>
    %126 = arith.truncf %125 : vector<8x8xf32> to vector<8x8xbf16>
    %127 = vector.extract_strided_slice %30 {offsets = [24, 0], sizes = [8, 32], strides = [1, 1]} : vector<32x32xbf16> to vector<8x32xbf16>
    %cst_44 = arith.constant dense<0.000000e+00> : vector<8x32xf32>
    %128 = tpu.matmul %126, %127, %cst_44 {dimension_numbers = #tpu.dot_dimension_numbers<[1], [0], [0], [1], [0, 0, 1, 1], [], []>} : vector<8x8xbf16>, vector<8x32xbf16>, vector<8x32xf32> -> vector<8x32xf32>
    %129 = arith.addf %105, %128 : vector<8x32xf32>
    %c0_45 = arith.constant 0 : index
    %c0_46 = arith.constant 0 : index
    %c0_47 = arith.constant 0 : index
    %130 = vector.load %arg17[%c0_45, %c0_46, %c0_47] : memref<1x8x32xf32, #tpu.memory_space<vmem>>, vector<1x8x32xf32>
    %131 = vector.shape_cast %130 : vector<1x8x32xf32> to vector<8x32xf32>
    %132 = vector.shape_cast %129 : vector<8x32xf32> to vector<1x8x32xf32>
    tpu.vector_store %arg17[%c0_45, %c0_46, %c0_47], %132 {strides = array<i32>} : memref<1x8x32xf32, #tpu.memory_space<vmem>>, vector<1x8x32xf32>,
    %c0_48 = arith.constant 0 : index
    %c0_49 = arith.constant 0 : index
    %133 = vector.load %arg8[%c0_48, %c0_49] : memref<1x32xf32, #tpu.memory_space<vmem>>, vector<1x32xf32>
    %c0_50 = arith.constant 0 : index
    %c0_51 = arith.constant 0 : index
    %134 = vector.load %arg9[%c0_50, %c0_51] : memref<1x32xf32, #tpu.memory_space<vmem>>, vector<1x32xf32>
    %cst_52 = arith.constant dense<0.000000e+00> : vector<8xf32>
    %135 = vector.multi_reduction <add>, %4, %cst_52 [1] : vector<8x32xf32> to vector<8xf32>
    %136 = vector.shape_cast %135 : vector<8xf32> to vector<8x1xf32>
    %cst_53 = arith.constant 3.200000e+01 : f32
    %137 = vector.broadcast %cst_53 : f32 to vector<8x1xf32>
    %138 = arith.divf %136, %137 : vector<8x1xf32>
    %139 = vector.broadcast %138 : vector<8x1xf32> to vector<8x32xf32>
    %140 = arith.subf %4, %139 : vector<8x32xf32>
    %141 = arith.mulf %140, %140 : vector<8x32xf32>
    %cst_54 = arith.constant dense<0.000000e+00> : vector<8xf32>
    %142 = vector.multi_reduction <add>, %141, %cst_54 [1] : vector<8x32xf32> to vector<8xf32>
    %143 = vector.shape_cast %142 : vector<8xf32> to vector<8x1xf32>
    %cst_55 = arith.constant 3.200000e+01 : f32
    %144 = vector.broadcast %cst_55 : f32 to vector<8x1xf32>
    %145 = arith.divf %143, %144 : vector<8x1xf32>
    %146 = vector.broadcast %138 : vector<8x1xf32> to vector<8x32xf32>
    %147 = arith.subf %4, %146 : vector<8x32xf32>
    %148 = vector.broadcast %133 : vector<1x32xf32> to vector<8x32xf32>
    %149 = arith.mulf %148, %147 : vector<8x32xf32>
    %cst_56 = arith.constant 9.99999996E-13 : f32
    %150 = vector.broadcast %cst_56 : f32 to vector<8x1xf32>
    %151 = arith.addf %145, %150 : vector<8x1xf32>
    %152 = math.rsqrt %151 : vector<8x1xf32>
    %153 = vector.broadcast %152 : vector<8x1xf32> to vector<8x32xf32>
    %154 = arith.mulf %149, %153 : vector<8x32xf32>
    %155 = vector.broadcast %134 : vector<1x32xf32> to vector<8x32xf32>
    %156 = arith.addf %154, %155 : vector<8x32xf32>
    %157 = arith.truncf %156 : vector<8x32xf32> to vector<8x32xbf16>
    %c0_57 = arith.constant 0 : index
    %c0_58 = arith.constant 0 : index
    %158 = vector.load %arg10[%c0_57, %c0_58] : memref<32x128xbf16, #tpu.memory_space<vmem>>, vector<32x128xbf16>
    %cst_59 = arith.constant dense<0.000000e+00> : vector<8x128xf32>
    %159 = tpu.matmul %157, %158, %cst_59 {dimension_numbers = #tpu.dot_dimension_numbers<[1], [0], [0], [1], [0, 0, 1, 1], [], []>} : vector<8x32xbf16>, vector<32x128xbf16>, vector<8x128xf32> -> vector<8x128xf32>
    %c0_60 = arith.constant 0 : index
    %c0_61 = arith.constant 0 : index
    %160 = vector.load %arg11[%c0_60, %c0_61] : memref<1x128xf32, #tpu.memory_space<vmem>>, vector<1x128xf32>
    %161 = vector.broadcast %160 : vector<1x128xf32> to vector<8x128xf32>
    %162 = arith.addf %159, %161 : vector<8x128xf32>
    %cst_62 = arith.constant 5.000000e-01 : f32
    %163 = vector.broadcast %cst_62 : f32 to vector<8x128xf32>
    %164 = arith.mulf %163, %162 : vector<8x128xf32>
    %cst_63 = arith.constant 4.471500e-02 : f32
    %165 = vector.broadcast %cst_63 : f32 to vector<8x128xf32>
    %166 = arith.mulf %165, %162 : vector<8x128xf32>
    %167 = arith.mulf %166, %162 : vector<8x128xf32>
    %168 = arith.mulf %167, %162 : vector<8x128xf32>
    %169 = arith.addf %162, %168 : vector<8x128xf32>
    %cst_64 = arith.constant 0.797884583 : f32
    %170 = vector.broadcast %cst_64 : f32 to vector<8x128xf32>
    %171 = arith.mulf %170, %169 : vector<8x128xf32>
    %172 = math.tanh %171 : vector<8x128xf32>
    %cst_65 = arith.constant 1.000000e+00 : f32
    %173 = vector.broadcast %cst_65 : f32 to vector<8x128xf32>
    %174 = arith.addf %173, %172 : vector<8x128xf32>
    %175 = arith.mulf %164, %174 : vector<8x128xf32>
    %176 = arith.truncf %175 : vector<8x128xf32> to vector<8x128xbf16>
    %c0_66 = arith.constant 0 : index
    %c0_67 = arith.constant 0 : index
    %177 = vector.load %arg12[%c0_66, %c0_67] : memref<128x32xbf16, #tpu.memory_space<vmem>>, vector<128x32xbf16>
    %cst_68 = arith.constant dense<0.000000e+00> : vector<8x32xf32>
    %178 = tpu.matmul %176, %177, %cst_68 {dimension_numbers = #tpu.dot_dimension_numbers<[1], [0], [0], [1], [0, 0, 1, 1], [], []>} : vector<8x128xbf16>, vector<128x32xbf16>, vector<8x32xf32> -> vector<8x32xf32>
    %c0_69 = arith.constant 0 : index
    %c0_70 = arith.constant 0 : index
    %179 = vector.load %arg13[%c0_69, %c0_70] : memref<1x32xf32, #tpu.memory_space<vmem>>, vector<1x32xf32>
    %180 = vector.broadcast %179 : vector<1x32xf32> to vector<8x32xf32>
    %181 = arith.addf %178, %180 : vector<8x32xf32>
    %182 = arith.addf %181, %156 : vector<8x32xf32>
    %c0_71 = arith.constant 0 : index
    %c0_72 = arith.constant 0 : index
    %183 = vector.load %arg14[%c0_71, %c0_72] : memref<1x32xf32, #tpu.memory_space<vmem>>, vector<1x32xf32>
    %c0_73 = arith.constant 0 : index
    %c0_74 = arith.constant 0 : index
    %184 = vector.load %arg15[%c0_73, %c0_74] : memref<1x32xf32, #tpu.memory_space<vmem>>, vector<1x32xf32>
    %cst_75 = arith.constant dense<0.000000e+00> : vector<8xf32>
    %185 = vector.multi_reduction <add>, %182, %cst_75 [1] : vector<8x32xf32> to vector<8xf32>
    %186 = vector.shape_cast %185 : vector<8xf32> to vector<8x1xf32>
    %cst_76 = arith.constant 3.200000e+01 : f32
    %187 = vector.broadcast %cst_76 : f32 to vector<8x1xf32>
    %188 = arith.divf %186, %187 : vector<8x1xf32>
    %189 = vector.broadcast %188 : vector<8x1xf32> to vector<8x32xf32>
    %190 = arith.subf %182, %189 : vector<8x32xf32>
    %191 = arith.mulf %190, %190 : vector<8x32xf32>
    %cst_77 = arith.constant dense<0.000000e+00> : vector<8xf32>
    %192 = vector.multi_reduction <add>, %191, %cst_77 [1] : vector<8x32xf32> to vector<8xf32>
    %193 = vector.shape_cast %192 : vector<8xf32> to vector<8x1xf32>
    %cst_78 = arith.constant 3.200000e+01 : f32
    %194 = vector.broadcast %cst_78 : f32 to vector<8x1xf32>
    %195 = arith.divf %193, %194 : vector<8x1xf32>
    %196 = vector.broadcast %188 : vector<8x1xf32> to vector<8x32xf32>
    %197 = arith.subf %182, %196 : vector<8x32xf32>
    %198 = vector.broadcast %183 : vector<1x32xf32> to vector<8x32xf32>
    %199 = arith.mulf %198, %197 : vector<8x32xf32>
    %cst_79 = arith.constant 9.99999996E-13 : f32
    %200 = vector.broadcast %cst_79 : f32 to vector<8x1xf32>
    %201 = arith.addf %195, %200 : vector<8x1xf32>
    %202 = math.rsqrt %201 : vector<8x1xf32>
    %203 = vector.broadcast %202 : vector<8x1xf32> to vector<8x32xf32>
    %204 = arith.mulf %199, %203 : vector<8x32xf32>
    %205 = vector.broadcast %184 : vector<1x32xf32> to vector<8x32xf32>
    %206 = arith.addf %204, %205 : vector<8x32xf32>
    %c0_80 = arith.constant 0 : index
    %c0_81 = arith.constant 0 : index
    %c0_82 = arith.constant 0 : index
    %207 = vector.load %arg16[%c0_80, %c0_81, %c0_82] : memref<1x8x32xf32, #tpu.memory_space<vmem>>, vector<1x8x32xf32>
    %208 = vector.shape_cast %207 : vector<1x8x32xf32> to vector<8x32xf32>
    %209 = vector.shape_cast %206 : vector<8x32xf32> to vector<1x8x32xf32>
    tpu.vector_store %arg16[%c0_80, %c0_81, %c0_82], %209 {strides = array<i32>} : memref<1x8x32xf32, #tpu.memory_space<vmem>>, vector<1x8x32xf32>,
    return
  }
  func.func @transform_0(%arg0: i32, %arg1: i32) -> (i32, i32, i32) {
    %c0_i32 = arith.constant 0 : i32
    %c0_i32_0 = arith.constant 0 : i32
    %c0_i32_1 = arith.constant 0 : i32
    return %arg0, %c0_i32, %c0_i32_0 : i32, i32, i32
  }
  func.func @transform_1(%arg0: i32, %arg1: i32) -> (i32, i32, i32) {
    %c0_i32 = arith.constant 0 : i32
    %c0_i32_0 = arith.constant 0 : i32
    %c0_i32_1 = arith.constant 0 : i32
    return %arg0, %c0_i32, %c0_i32_0 : i32, i32, i32
  }
  func.func @transform_2(%arg0: i32, %arg1: i32) -> (i32, i32) {
    %c0_i32 = arith.constant 0 : i32
    %c0_i32_0 = arith.constant 0 : i32
    %c0_i32_1 = arith.constant 0 : i32
    return %c0_i32, %c0_i32_0 : i32, i32
  }
  func.func @transform_3(%arg0: i32, %arg1: i32) -> (i32, i32) {
    %c0_i32 = arith.constant 0 : i32
    %c0_i32_0 = arith.constant 0 : i32
    %c0_i32_1 = arith.constant 0 : i32
    return %c0_i32, %c0_i32_0 : i32, i32
  }
  func.func @transform_4(%arg0: i32, %arg1: i32) -> (i32, i32) {
    %c0_i32 = arith.constant 0 : i32
    %c0_i32_0 = arith.constant 0 : i32
    %c0_i32_1 = arith.constant 0 : i32
    return %c0_i32, %c0_i32_0 : i32, i32
  }
  func.func @transform_5(%arg0: i32, %arg1: i32) -> (i32, i32) {
    %c0_i32 = arith.constant 0 : i32
    %c0_i32_0 = arith.constant 0 : i32
    %c0_i32_1 = arith.constant 0 : i32
    return %c0_i32, %c0_i32_0 : i32, i32
  }
  func.func @transform_6(%arg0: i32, %arg1: i32) -> (i32, i32) {
    %c0_i32 = arith.constant 0 : i32
    %c0_i32_0 = arith.constant 0 : i32
    %c0_i32_1 = arith.constant 0 : i32
    return %c0_i32, %c0_i32_0 : i32, i32
  }
  func.func @transform_7(%arg0: i32, %arg1: i32) -> (i32, i32) {
    %c0_i32 = arith.constant 0 : i32
    %c0_i32_0 = arith.constant 0 : i32
    %c0_i32_1 = arith.constant 0 : i32
    return %c0_i32, %c0_i32_0 : i32, i32
  }
  func.func @transform_8(%arg0: i32, %arg1: i32) -> (i32, i32) {
    %c0_i32 = arith.constant 0 : i32
    %c0_i32_0 = arith.constant 0 : i32
    %c0_i32_1 = arith.constant 0 : i32
    return %c0_i32, %c0_i32_0 : i32, i32
  }
  func.func @transform_9(%arg0: i32, %arg1: i32) -> (i32, i32) {
    %c0_i32 = arith.constant 0 : i32
    %c0_i32_0 = arith.constant 0 : i32
    %c0_i32_1 = arith.constant 0 : i32
    return %c0_i32, %c0_i32_0 : i32, i32
  }
  func.func @transform_10(%arg0: i32, %arg1: i32) -> (i32, i32) {
    %c0_i32 = arith.constant 0 : i32
    %c0_i32_0 = arith.constant 0 : i32
    %c0_i32_1 = arith.constant 0 : i32
    return %c0_i32, %c0_i32_0 : i32, i32
  }
  func.func @transform_11(%arg0: i32, %arg1: i32) -> (i32, i32) {
    %c0_i32 = arith.constant 0 : i32
    %c0_i32_0 = arith.constant 0 : i32
    %c0_i32_1 = arith.constant 0 : i32
    return %c0_i32, %c0_i32_0 : i32, i32
  }
  func.func @transform_12(%arg0: i32, %arg1: i32) -> (i32, i32) {
    %c0_i32 = arith.constant 0 : i32
    %c0_i32_0 = arith.constant 0 : i32
    %c0_i32_1 = arith.constant 0 : i32
    return %c0_i32, %c0_i32_0 : i32, i32
  }
  func.func @transform_13(%arg0: i32, %arg1: i32) -> (i32, i32) {
    %c0_i32 = arith.constant 0 : i32
    %c0_i32_0 = arith.constant 0 : i32
    %c0_i32_1 = arith.constant 0 : i32
    return %c0_i32, %c0_i32_0 : i32, i32
  }
  func.func @transform_14(%arg0: i32, %arg1: i32) -> (i32, i32, i32) {
    %c0_i32 = arith.constant 0 : i32
    %c0_i32_0 = arith.constant 0 : i32
    return %arg0, %arg1, %c0_i32 : i32, i32, i32
  }
  func.func @transform_15(%arg0: i32, %arg1: i32) -> (i32, i32, i32) {
    %c0_i32 = arith.constant 0 : i32
    %c0_i32_0 = arith.constant 0 : i32
    return %arg0, %arg1, %c0_i32 : i32, i32, i32
  }
}

</mosaic_0001>

<bundles_post_ra>
// kernel: tpu_custom_call.1
= control target key start
LH: loop header
LB: loop body
LE: loop exit
PB: predicated region body
PF: predicated region fallthrough
CT: control target
= control target key end

     0   :  { %s1961_s0 = inlined_call_operand.vmem [shape: f32[2,8,32], index: 0, kind: input, shape index: {}]   ;;  %s1962_s1 = inlined_call_operand.vmem [shape: f32[2,1,8], index: 1, kind: input, shape index: {}]   ;;  %s1963_s2 = inlined_call_operand.vmem [shape: bf16[32,96], index: 2, kind: input, shape index: {}]   ;;  %s1964_s3 = inlined_call_operand.vmem [shape: f32[1,96], index: 3, kind: input, shape index: {}]   ;;  %s1965_s4 = inlined_call_operand.vmem [shape: bf16[32,32], index: 4, kind: input, shape index: {}]   ;;  %s1966_s5 = inlined_call_operand.vmem [shape: f32[1,32], index: 5, kind: input, shape index: {}]   ;;  %s1967_s6 = inlined_call_operand.vmem [shape: f32[1,32], index: 6, kind: input, shape index: {}]   ;;  %s1968_s7 = inlined_call_operand.vmem [shape: f32[1,32], index: 7, kind: input, shape index: {}]   ;;  %s1969_s8 = inlined_call_operand.vmem [shape: bf16[32,128], index: 8, kind: input, shape index: {}]   ;;  %s1970_s9 = inlined_call_operand.vmem [shape: f32[1,128], index: 9, kind: input, shape index: {}]   ;;  %s1971_s10 = inlined_call_operand.vmem [shape: bf16[128,32], index: 10, kind: input, shape index: {}]   ;;  %s1972_s11 = inlined_call_operand.vmem [shape: f32[1,32], index: 11, kind: input, shape index: {}]   ;;  %s1973_s12 = inlined_call_operand.vmem [shape: f32[1,32], index: 12, kind: input, shape index: {}]   ;;  %s1974_s13 = inlined_call_operand.vmem [shape: f32[1,32], index: 13, kind: input, shape index: {}]   ;;  %s1975_s14 = inlined_call_operand.hbm [shape: f32[2,8,32], index: 14, kind: output, shape index: {0}]   ;;  %s1976_s15 = inlined_call_operand.hbm [shape: f32[2,8,32], index: 15, kind: output, shape index: {1}]  }
   0x1   :  { %1981 = sst [smem:[#allocation11_spill]] %s1961_s0 }
   0x2   :  { %1982 = sst [smem:[#allocation12_spill]] %s1962_s1 }
   0x3   :  { %1983 = sst [smem:[#allocation13_spill]] %s1963_s2 }
   0x4   :  { %1984 = sst [smem:[#allocation14_spill]] %s1964_s3 }
   0x5   :  { %1985 = sst [smem:[#allocation15_spill]] %s1965_s4 }
   0x6   :  { %1986 = sst [smem:[#allocation16_spill]] %s1966_s5 }
   0x7   :  { %1987 = sst [smem:[#allocation17_spill]] %s1967_s6 }
   0x8   :  { %1988 = sst [smem:[#allocation18_spill]] %s1968_s7 }
   0x9   :  { %21 = vsyncpa [#allocation3], 0 }
   0xa   :  { %23 = vsyncpa [#allocation3 + $0x1], 0 }
   0xb   :  { %24 = vsyncpa [#allocation5], 0 }
   0xc   :  { %26 = vsyncpa [#allocation5 + $0x1], 0  ;;  %s1677_s18 = smov 0   ;;  %s1679_s19 = smov 0  }
   0xd   :  { %s1681_s20 = smov 0   ;;  %s1683_s21 = smov 0  }
   0xe   :  { %s1685_s22 = smov 0   ;;  %s1687_s23 = smov 0  }
   0xf LB: > { %1989 = sst [smem:[#allocation8_spill]] %s1567_s18  ;;  %s1288_s24 = sadd.s32 4294967295, %s1587_s23   ;;  %s1587_s23 = sphi %s1687_s23, %s32_s23   ;;  %s1583_s22 = sphi %s1685_s22, %s2005_s22   ;;  %s1579_s21 = sphi %s1683_s21, %s2004_s21   ;;  %s1575_s20 = sphi %s1681_s20, %s2008_s20   ;;  %s1571_s19 = sphi %s1679_s19, %s2007_s19   ;;  %s1567_s18 = sphi %s1677_s18, %s2006_s18  }
  0x10   : > { %1990 = sst [smem:[#allocation9_spill]] %s1583_s22  ;;  %s1289_s25 = sadd.s32 4294967294, %s1587_s23  }
  0x11   : > { %s44_s26 = sadd.s32 1, %s1583_s22  ;;  %s357_s27 = sadd.s32 1, %s1575_s20 }
  0x12   : > { %p46_p0 = scmp.ge.s32.totalorder %s44_s26, 2  ;;  %p367_p1 = scmp.ne.s32.totalorder %s1575_s20, %s1571_s19 }
  0x13   : > { %p368_p2 = scmp.eq.s32.totalorder %s1288_s24, 1  ;;  %p373_p3 = scmp.ne.s32.totalorder %s1571_s19, %s1567_s18 }
  0x14   : > { %s2010_s26 = smov (%p46_p0, %s44_s26), 0  ;;  %p374_p5 = scmp.eq.s32.totalorder %s1289_s25, 1 }
  0x15   : > { %1991 = sst [smem:[#allocation10_spill]] %s2010_s26  ;;  %p1717_p4 = por %p368_p2, %p367_p1 }
  0x16   : > { %s352_s29 = ssub.s32 %s1583_s22, %s2010_s26  ;;  %p1292_p6 = scmp.ge.s32.totalorder %s1587_s23, 1 }
  0x17   : > { %p355_p7 = scmp.eq.s32.totalorder %s352_s29, 0  ;;  %p1724_p8 = por %p374_p5, %p373_p3 }
  0x18   : > { %p469_p9 = scmp.lt.s32.totalorder %s1587_s23, 3 }
  0x19   : > { %s1730_s16 = scalar_select %p355_p7, %s1575_s20, %s357_s27  }
  0x1a   : > { %p470_p10 = pnand %p1292_p6, %p469_p9 }
  0x1b   : > { %s1994_s2 = sld [smem:[#allocation13_spill]] (!%p470_p10)  ;;  %s1589_s18 = smov (!%p470_p10), 96  }
  0x1c   : > { %473 = sbr.rel (%p470_p10) target bundleno = 2039 (0x7f7), region = 76  ;;  %p524_p11 = scmp.lt.s32.totalorder (!%p470_p10), %s1579_s21, 1 }
  0x1d   : > { %s1995_s0 = sld [smem:[#allocation11_spill]] (!%p470_p10)  ;;  %s1593_s25 = smov (!%p470_p10), 80  }
  0x1e   : > { %s1996_s3 = sld [smem:[#allocation14_spill]] (!%p470_p10)  ;;  %s1594_s29 = smov (!%p470_p10), 104  }
  0x1f   : > { %s1997_s1 = sld [smem:[#allocation12_spill]] (!%p470_p10) }
  0x20   : > { %s1998_s4 = sld [smem:[#allocation15_spill]] (!%p470_p10) }
  0x21   : > { %v1366_v0 = vld [vmem:[%s1994_s2 + $0x8] sm:$0xff]  ;;  %v1365_v1 = vld [vmem:[%s1994_s2] sm:$0xff]  ;;  %s1742_s27 = scalar_select %p524_p11, %s1579_s21, 1  ;;  %vm560_vm0 = vcmask 261120   ;;  %vm613_vm1 = vcmask 64512   ;;  %vm658_vm2 = vcmask 1043456  }
  0x22   : > { %580 = vrot.lane.b32.xlu0 %v1366_v0, %s1589_s18  ;;  %570 = vmatpush.bf16.msra.mxu0 %v1366_v0  ;;  %s1999_s5 = sld [smem:[#allocation16_spill]] }
  0x23   : > { %s1295_s26 = sshll.u32 %s1742_s27, 3  ;;  %s2000_s6 = sld [smem:[#allocation17_spill]] }
  0x24   : > { %s527_s22 = scalar_lea.vmem %s1995_s0, %s1295_s26  ;;  %v1445_v4 = vld [vmem:[%s1996_s3] ss:$0 sm:$0xff]  ;;  %s2001_s7 = sld [smem:[#allocation18_spill]] }
  0x25   : > { %v1748_v2 = vld [vmem:[%s527_s22] sm:$0xff]  ;;  %584 = vrot.lane.b32.xlu1 %v1445_v4, %s1589_s18  ;;  %s1590_s22 = smov 120   ;;  %s530_s24 = scalar_lea.vmem %s1997_s1, %s1742_s27 }
  0x26   : > { %571 = vmatpush.bf16.msra.mxu0 %v1365_v1  ;;  %v577_v3 = vpack.c.bf16 %v1748_v2, %v1748_v2  ;;  %v536_v24 = vld [vmem:[%s530_s24] sm:$0x1]  ;;  %s1591_s27 = smov 112   ;;  %v606_v58 = vld [vmem:[%s1998_s4 + $0x4] sm:$0xf]  ;;  %s1884_s0 = sand.u32 1, %s1571_s19  }
  0x27   : > { %v537_v25 = vsub.f32 1.0, %v536_v24  ;;  %v605_v56 = vld [vmem:[%s1998_s4] sm:$0xf]  ;;  %v762_v59 = vsel %vm658_vm2, %v606_v58, 0 }
  0x28   : > { %v680_v57 = vsel %vm658_vm2, %v605_v56, 0 }
  0x29   : > { %1304 = vmatmul.msk.bf16.vlgmr.msra.gmra.mxu0 %vm560_vm0, %v577_v3  ;;  %v538_v26 = vmul.f32 -10000.0, %v537_v25 }
  0x2a   : > { %578 = vrot.lane.b32.xlu0 %v1365_v1, %s1589_s18 }
  0x2b   : > { %v1772_v27 = vperm.slane %v538_v26, 0 }
  0x94   : > { %v581_v5 = vpop.permute.xlu0 %580 }
  0x95   : > { %596 = vmatpush.bf16.msra.mxu1 %v581_v5 }
  0x97   : > { %v585_v13 = vpop.permute.xlu1 %584 }
  0x9c   : > { %v579_v6 = vpop.permute.xlu0 %578 }
  0x9d   : > { %597 = vmatpush.bf16.msra.mxu1 %v579_v6 }
  0xa0   : > { %1305 = vmatmul.msk.bf16.vlgmr.msra.gmra.mxu1 %vm560_vm0, %v577_v3 }
  0xa6   : > { %v573_v7 = vpop.f32.mrf.mxu0 }
  0xa7   : > { %v574_v8 = vadd.f32 %v1445_v4, %v573_v7 }
  0xa9   : > { %v603_v9 = vpack.c.bf16 %v574_v8, %v574_v8 }
  0xab   : > { %v697_v10 = vunpack.c.l.b16 %v603_v9 }
  0xad   : > { %v1758_v11 = vpack.c.b16 %v697_v10, %v697_v10 }
  0xae   : > { %v575_v12 = vpop.f32.mrf.mxu0 }
  0xaf   : > { %699 = vrot.lane.b32.xlu2 %v1758_v11, %s1590_s22 }
 0x109   : > { %v700_v23 = vpop.permute.xlu2 %699 }
 0x11d   : > { %v599_v14 = vpop.f32.mrf.mxu1 }
 0x11e   : > { %v600_v15 = vadd.f32 %v599_v14, %v585_v13 }
 0x120   : > { %v604_v16 = vpack.c.bf16 %v600_v15, %v600_v15 }
 0x122   : > { %v651_v17 = vunpack.c.l.b16 %v604_v16  ;;  %v618_v18 = vsel %vm613_vm1, %v604_v16, 0 }
 0x123   : > { %627 = vmatpush.bf16.xpose.msra.mxu2 %v618_v18 }
 0x124   : > { %v1762_v19 = vpack.c.b16 %v651_v17, %v651_v17 }
 0x125   : > { %v601_v20 = vpop.f32.mrf.mxu1 }
 0x126   : > { %701 = vrot.lane.b32.xlu1 %v1762_v19, %s1590_s22  ;;  %v939_v20 = vsel %vm560_vm0, %v1748_v2, 0.0  ;;  %s1361_s22 = sshll.u32 %s1579_s21, 3 }
 0x127   : > { %s1170_s24 = scalar_lea.hbm %s1976_s15, %s1361_s22 }
 0x12a   : > { %1306 = vmatmul.msk.bf16.vlgmr.msra.gmra.mxu2 %vm613_vm1, %v603_v9 }
 0x198   : > { %v702_v21 = vpop.permute.xlu1 %701 }
 0x199   : > { %v707_v22 = vsel %vm613_vm1, %v702_v21, 0  ;;  %v1446_v21 = vld [vmem:[%s1999_s5] ss:$0 sm:$0xff]  ;;  %s1497_s5 = scalar_lea.hbm %s1976_s15, 16 }
 0x19a   : > { %716 = vmatpush.bf16.xpose.msrb.mxu0 %v707_v22 }
 0x1a1   : > { %1309 = vmatmul.msk.bf16.vlgmr.msrb.gmra.mxu0 %vm613_vm1, %v700_v23 }
 0x1ad   : > { %v629_v28 = vpop.f32.mrf.mxu2 }
 0x1ae   : > { %v633_v29 = vmul.f32 0.35355338, %v629_v28 }
 0x1b0   : > { %v637_v30 = vadd.f32 %v1772_v27, %v633_v29 }
 0x1b2   : > { %v638_v31 = vsel %vm613_vm1, %v637_v30, -inf }
 0x1b3   : > { %639 = vmax.xlane.f32.xlu2 %v638_v31 }
 0x1b5   : > { %v631_v32 = vpop.f32.mrf.mxu2 }
 0x1b6   : > { %v1595_v32 = vmov 32.0  }
 0x1cb   : > { %653 = vrot.lane.b32.xlu2 %v1762_v19, %s1589_s18  ;;  %s1592_s18 = smov 88  }
 0x1d3   : > { %778 = vrot.lane.b32.xlu2 %v1758_v11, %s1591_s27 }
 0x21e   : > { %v718_v33 = vpop.f32.mrf.mxu0 }
 0x21f   : > { %v722_v34 = vmul.f32 0.35355338, %v718_v33 }
 0x221   : > { %v723_v35 = vadd.f32 %v722_v34, %v1772_v27 }
 0x223   : > { %v724_v36 = vsel %vm613_vm1, %v723_v35, -inf }
 0x224   : > { %725 = vmax.xlane.f32.xlu0 %v724_v36 }
 0x226   : > { %v640_v37 = vpop.xlane.xlu2 %639  ;;  %v720_v38 = vpop.f32.mrf.mxu0 }
 0x227   : > { %v641_v39 = vsub.f32 %v637_v30, %v640_v37 }
 0x229   : > { %v642_v40 = vmul.f32 1.442695, %v641_v39 }
 0x22b   : > { %1453 = vpow2.f32 %v642_v40 }
 0x22e   : > { %v654_v41 = vpop.permute.xlu2 %653 }
 0x22f   : > { %v660_v42 = vsel %vm658_vm2, %v654_v41, 0 }
 0x230   : > { %669 = vmatpush.bf16.msra.mxu3 %v660_v42 }
 0x231   : > { %v1454_v43 = vpop.eup %1453 }
 0x232   : > { %v644_v44 = vsel %vm613_vm1, %v1454_v43, 0.0 }
 0x233   : > { %645 = vadd.xlane.f32.xlu1 %v644_v44 }
 0x234   : > { %689 = vmatpush.bf16.msrb.mxu3 %v680_v57 }
 0x236   : > { %v779_v14 = vpop.permute.xlu2 %778 }
 0x24c   : > { %736 = vrot.lane.b32.xlu1 %v1762_v19, %s1592_s18 }
 0x297   : > { %v726_v45 = vpop.xlane.xlu0 %725 }
 0x298   : > { %v727_v46 = vsub.f32 %v723_v35, %v726_v45 }
 0x29a   : > { %v728_v47 = vmul.f32 1.442695, %v727_v46 }
 0x29c   : > { %1455 = vpow2.f32 %v728_v47 }
 0x2a2   : > { %v1456_v48 = vpop.eup %1455 }
 0x2a3   : > { %v730_v49 = vsel %vm613_vm1, %v1456_v48, 0.0 }
 0x2a4   : > { %731 = vadd.xlane.f32.xlu0 %v730_v49 }
 0x2a6   : > { %v646_v50 = vpop.xlane.xlu1 %645 }
 0x2a7   : > { %1457 = vrcp.f32 %v646_v50 }
 0x2ad   : > { %v1458_v51 = vpop.eup %1457 }
 0x2ae   : > { %v648_v52 = vmul.f32 %v1458_v51, %v1454_v43 }
 0x2b0   : > { %v649_v53 = vpack.c.bf16 %v648_v52, %v648_v52  ;;  %v607_v52 = vld [vmem:[%s1998_s4 + $0x8] sm:$0xf] }
 0x2b2   : > { %1307 = vmatmul.msk.bf16.vlgmr.msra.gmra.mxu3 %vm613_vm1, %v649_v53  ;;  %v841_v53 = vsel %vm658_vm2, %v607_v52, 0 }
 0x2b3   : > { %771 = vmatpush.bf16.msra.mxu3 %v762_v59 }
 0x2b8   : > { %780 = vrot.lane.b32.xlu0 %v1762_v19, %s1591_s27  ;;  %s1980_s27 = sshll.u32 %s1884_s0, 3 }
 0x2b9   : > { %s523_s18 = scalar_lea.vmem [#allocation4], %s1980_s27  ;;  %s1144_s27 = scalar_lea.sflag [#allocation5], %s1884_s0 }
 0x2be   : > { %v737_v54 = vpop.permute.xlu1 %736 }
 0x2bf   : > { %v742_v55 = vsel %vm658_vm2, %v737_v54, 0 }
 0x2c0   : > { %815 = vrot.lane.b32.xlu0 %v1762_v19, %s1593_s25  ;;  %751 = vmatpush.bf16.msrb.mxu1 %v742_v55  ;;  %s1596_s25 = smov 72  }
 0x2c4   : > { %850 = vmatpush.bf16.msra.mxu1 %v841_v53 }
 0x2c8   : > { %859 = vrot.lane.b32.xlu0 %v1762_v19, %s1594_s29 }
 0x2d0   : > { %857 = vrot.lane.b32.xlu0 %v1758_v11, %s1594_s29  ;;  %s1174_s29 = sshll.u32 %s1170_s24, 4  ;;  %s1175_s29 = int_to_ptr.hbm [resolvable:$true] %s1174_s29 }
 0x2d1   : > { %s1491_s1 = sshra.s32 %s1175_s29, 4  ;;  %s1492_s1 = int_to_ptr.hbm [resolvable:$true] %s1491_s1 }
 0x2d2   : > { %s1493_s2 = scalar_lea.hbm %s1492_s1, 8  ;;  %p1498_p1 = scmp.lt.s32.totalorder %s1492_s1, %s1976_s15 }
 0x2d3   : > { %p1494_p12 = scmp.ne.s32.totalorder %s1492_s1, %s1493_s2  ;;  %p1499_p2 = scmp.lt.s32.totalorder %s1497_s5, %s1493_s2 }
 0x2d5   : > { %p1495_p13 = pnand %p1494_p12, %p1717_p4  ;;  %p1500_p3 = por %p1499_p2, %p1498_p1 }
 0x2d7   : > { %p1496_p0 = pneg %p1495_p13 }
 0x2d9   : > { %p1501_p5 = pnand %p1500_p3, %p1496_p0 }
 0x2fa   : > { %940 = vadd.xlane.f32.xlu0 %v939_v20  ;;  %v1448_v20 = vld [vmem:[%s2001_s7] ss:$0 sm:$0xff] }
 0x317   : > { %v732_v60 = vpop.xlane.xlu0 %731 }
 0x318   : > { %1459 = vrcp.f32 %v732_v60 }
 0x319   : > { %1461 = vrcp.f32 %v1595_v32  ;;  %v1373_v32 = vld [vmem:[%s1971_s10 + $0x20] sm:$0xff] }
 0x31e   : > { %v1460_v61 = vpop.eup %1459 }
 0x31f   : > { %v734_v62 = vmul.f32 %v1460_v61, %v1456_v48  ;;  %v1462_v33 = vpop.eup %1461 }
 0x320   : > { %v943_v34 = vmul.f32 32.0, %v1462_v33  ;;  %vm947_vm3 = vweird.f32 %v1462_v33 }
 0x321   : > { %v735_v63 = vpack.c.bf16 %v734_v62, %v734_v62 }
 0x322   : > { %v944_v35 = vsub.f32 1.0, %v943_v34  ;;  %v1371_v34 = vld [vmem:[%s1971_s10 + $0x10] sm:$0xff] }
 0x323   : > { %1310 = vmatmul.msk.bf16.vlgmr.msrb.gmra.mxu1 %vm613_vm1, %v735_v63 }
 0x324   : > { %v945_v36 = vmul.f32 %v1462_v33, %v944_v35 }
 0x326   : > { %v946_v37 = vadd.f32 %v1462_v33, %v945_v36  ;;  %v1370_v36 = vld [vmem:[%s1971_s10 + $0x8] sm:$0xff] }
 0x328   : > { %v1818_v38 = vsel %vm947_vm3, %v1462_v33, %v946_v37  ;;  %v1372_v33 = vld [vmem:[%s1971_s10 + $0x18] sm:$0xff] }
 0x32a   : > { %v781_v0 = vpop.permute.xlu0 %780 }
 0x32b   : > { %v786_v6 = vsel %vm613_vm1, %v781_v0, 0 }
 0x332   : > { %v816_v1 = vpop.permute.xlu0 %815 }
 0x333   : > { %v821_v3 = vsel %vm658_vm2, %v816_v1, 0  ;;  %v1368_v1 = vld [vmem:[%s1969_s8 + $0x8] sm:$0xff] }
 0x334   : > { %830 = vmatpush.bf16.msra.mxu0 %v821_v3  ;;  %1006 = vmatpush.bf16.msrb.mxu1 %v1368_v1  ;;  %v1367_v3 = vld [vmem:[%s1969_s8] sm:$0xff] }
 0x335   : > { %v671_v4 = vpop.f32.mrf.mxu3 }
 0x336   : > { %v675_v5 = vpack.c.bf16 %v671_v4, %v671_v4 }
 0x338   : > { %1308 = vmatmul.msk.bf16.vlgmr.msrb.gmra.mxu3 %vm613_vm1, %v675_v5  ;;  %1007 = vmatpush.bf16.msrb.mxu1 %v1367_v3 }
 0x339   : > { %795 = vmatpush.bf16.xpose.msrb.mxu3 %v786_v6 }
 0x33a   : > { %v860_v7 = vpop.permute.xlu0 %859 }
 0x33b   : > { %v865_v8 = vsel %vm613_vm1, %v860_v7, 0 }
 0x33c   : > { %874 = vmatpush.bf16.xpose.msrb.mxu2 %v865_v8 }
 0x33d   : > { %v673_v9 = vpop.f32.mrf.mxu3 }
 0x342   : > { %v858_v10 = vpop.permute.xlu0 %857 }
 0x343   : > { %1315 = vmatmul.msk.bf16.vlgmr.msrb.gmra.mxu2 %vm613_vm1, %v858_v10 }
 0x36d   : > { %v941_v39 = vpop.xlane.xlu0 %940 }
 0x36e   : > { %v949_v40 = vmul.f32 %v1818_v38, %v941_v39  ;;  %v1369_v39 = vld [vmem:[%s1971_s10] sm:$0xff] }
 0x370   : > { %v950_v41 = vsub.f32 %v1748_v2, %v949_v40 }
 0x372   : > { %v951_v42 = vmul.f32 %v950_v41, %v950_v41 }
 0x374   : > { %v952_v43 = vsel %vm560_vm0, %v951_v42, 0.0 }
 0x3a0   : > { %v753_v11 = vpop.f32.mrf.mxu1 }
 0x3a1   : > { %v757_v12 = vpack.c.bf16 %v753_v11, %v753_v11  ;;  %v1447_v11 = vld [vmem:[%s2000_s6] ss:$0 sm:$0xff] }
 0x3a3   : > { %1311 = vmatmul.msk.bf16.vlgmr.msra.gmra.mxu3 %vm613_vm1, %v757_v12 }
 0x3a8   : > { %v755_v13 = vpop.f32.mrf.mxu1 }
 0x3b3   : > { %1312 = vmatmul.msk.bf16.vlgmr.msrb.gmra.mxu3 %vm613_vm1, %v779_v14  ;;  %v959_v14 = vmul.f32 %v1447_v11, %v950_v41  ;;  %v1449_v41 = vld [vmem:[%s1970_s9] ss:$0 sm:$0xff] }
 0x3bb   : > { %v691_v15 = vpop.f32.mrf.mxu3 }
 0x3bc   : > { %v695_v22 = vadd.f32 %v1446_v21, %v691_v15 }
 0x3c3   : > { %v693_v16 = vpop.f32.mrf.mxu3 }
 0x3c6   : > { %v876_v17 = vpop.f32.mrf.mxu2 }
 0x3c7   : > { %v880_v48 = vmul.f32 0.35355338, %v876_v17 }
 0x3c9   : > { %v881_v50 = vadd.f32 %v880_v48, %v1772_v27 }
 0x3cb   : > { %v882_v51 = vsel %vm613_vm1, %v881_v50, -inf }
 0x3ce   : > { %v878_v18 = vpop.f32.mrf.mxu2 }
 0x426   : > { %v773_v23 = vpop.f32.mrf.mxu3 }
 0x427   : > { %v1814_v24 = vadd.f32 %v773_v23, %v695_v22 }
 0x42e   : > { %v775_v25 = vpop.f32.mrf.mxu3 }
 0x436   : > { %v797_v26 = vpop.f32.mrf.mxu3 }
 0x437   : > { %v801_v28 = vmul.f32 0.35355338, %v797_v26  ;;  %v1376_v26 = vld [vmem:[%s1971_s10 + $0x38] sm:$0xff] }
 0x438   : > { %1091 = vmatpush.bf16.msra.mxu2 %v1376_v26 }
 0x439   : > { %v802_v29 = vadd.f32 %v801_v28, %v1772_v27  ;;  %v608_v28 = vld [vmem:[%s1998_s4 + $0xc] sm:$0xf] }
 0x43b   : > { %v803_v30 = vsel %vm613_vm1, %v802_v29, -inf }
 0x43c   : > { %804 = vmax.xlane.f32.xlu2 %v803_v30  ;;  %v1375_v30 = vld [vmem:[%s1971_s10 + $0x30] sm:$0xff] }
 0x43d   : > { %1092 = vmatpush.bf16.msra.mxu2 %v1375_v30 }
 0x43e   : > { %v799_v31 = vpop.f32.mrf.mxu3 }
 0x43f   : > { %v1374_v31 = vld [vmem:[%s1971_s10 + $0x28] sm:$0xff] }
 0x441   : > { %1093 = vmatpush.bf16.msra.mxu2 %v1374_v31 }
 0x444   : > { %953 = vadd.xlane.f32.xlu2 %v952_v43 }
 0x445   : > { %1094 = vmatpush.bf16.msra.mxu2 %v1373_v32 }
 0x449   : > { %1095 = vmatpush.bf16.msra.mxu2 %v1372_v33 }
 0x44d   : > { %1096 = vmatpush.bf16.msra.mxu2 %v1371_v34 }
 0x451   : > { %1097 = vmatpush.bf16.msra.mxu2 %v1370_v36 }
 0x455   : > { %1098 = vmatpush.bf16.msra.mxu2 %v1369_v39 }
 0x4af   : > { %v805_v44 = vpop.xlane.xlu2 %804 }
 0x4b0   : > { %v806_v45 = vsub.f32 %v802_v29, %v805_v44  ;;  %v920_v29 = vsel %vm658_vm2, %v608_v28, 0 }
 0x4b1   : > { %929 = vmatpush.bf16.msrb.mxu0 %v920_v29 }
 0x4b2   : > { %v807_v46 = vmul.f32 1.442695, %v806_v45 }
 0x4b4   : > { %1463 = vpow2.f32 %v807_v46 }
 0x4b7   : > { %v954_v62 = vpop.xlane.xlu2 %953 }
 0x4b8   : > { %v955_v63 = vmul.f32 %v954_v62, %v1818_v38 }
 0x4ba   : > { %v1464_v47 = vpop.eup %1463  ;;  %v960_v0 = vadd.f32 1e-12, %v955_v63 }
 0x4bb   : > { %v809_v49 = vsel %vm613_vm1, %v1464_v47, 0.0 }
 0x4bc   : > { %810 = vadd.xlane.f32.xlu1 %v809_v49  ;;  %vm967_vm4 = vweird.f32 %v960_v0 }
 0x4c4   : > { %883 = vmax.xlane.f32.xlu1 %v882_v51 }
 0x4dd   : > { %894 = vrot.lane.b32.xlu1 %v1762_v19, %s1596_s25  ;;  %s1172_s25 = sshll.u32 %s523_s18, 4  ;;  %s1173_s25 = int_to_ptr.vmem [resolvable:$true] %s1172_s25 }
 0x52f   : > { %v811_v2 = vpop.xlane.xlu1 %810 }
 0x530   : > { %1465 = vrcp.f32 %v811_v2 }
 0x536   : > { %v1466_v54 = vpop.eup %1465 }
 0x537   : > { %v813_v55 = vmul.f32 %v1466_v54, %v1464_v47  ;;  %v884_v56 = vpop.xlane.xlu1 %883 }
 0x538   : > { %v885_v57 = vsub.f32 %v881_v50, %v884_v56 }
 0x539   : > { %v814_v27 = vpack.c.bf16 %v813_v55, %v813_v55 }
 0x53a   : > { %v886_v58 = vmul.f32 1.442695, %v885_v57 }
 0x53b   : > { %1313 = vmatmul.msk.bf16.vlgmr.msra.gmra.mxu0 %vm613_vm1, %v814_v27 }
 0x53c   : > { %1467 = vpow2.f32 %v886_v58  ;;  %v1450_v58 = vld [vmem:[%s1972_s11] ss:$0 sm:$0xff] }
 0x53d   : > { %1469 = vrsqrt.f32 %v960_v0 }
 0x542   : > { %v1468_v59 = vpop.eup %1467 }
 0x543   : > { %v888_v19 = vsel %vm613_vm1, %v1468_v59, 0.0  ;;  %v1470_v4 = vpop.eup %1469 }
 0x544   : > { %889 = vadd.xlane.f32.xlu2 %v888_v19  ;;  %v962_v5 = vmul.f32 %v1470_v4, %v960_v0  ;;  %vm968_vm5 = vweird.f32 %v1470_v4 }
 0x545   : > { %vm969_vm6 = vmor %vm967_vm4, %vm968_vm5 }
 0x546   : > { %v963_v6 = vmul.f32 %v1470_v4, %v962_v5 }
 0x548   : > { %v964_v7 = vmul.f32 0.5, %v963_v6 }
 0x54a   : > { %v965_v8 = vsub.f32 1.5, %v964_v7 }
 0x54c   : > { %v966_v13 = vmul.f32 %v1470_v4, %v965_v8 }
 0x54e   : > { %v970_v16 = vsel %vm969_vm6, %v1470_v4, %v966_v13 }
 0x54f   : > { %v895_v60 = vpop.permute.xlu1 %894  ;;  %v971_v21 = vmul.f32 %v970_v16, %v959_v14 }
 0x550   : > { %v900_v61 = vsel %vm658_vm2, %v895_v60, 0 }
 0x551   : > { %909 = vmatpush.bf16.msra.mxu3 %v900_v61  ;;  %v975_v23 = vadd.f32 %v1448_v20, %v971_v21 }
 0x553   : > { %v976_v25 = vpack.c.bf16 %v975_v23, %v975_v23 }
 0x5b7   : > { %v890_v9 = vpop.xlane.xlu2 %889 }
 0x5b8   : > { %1471 = vrcp.f32 %v890_v9  ;;  %v832_v10 = vpop.f32.mrf.mxu0 }
 0x5b9   : > { %v836_v12 = vpack.c.bf16 %v832_v10, %v832_v10 }
 0x5bb   : > { %1314 = vmatmul.msk.bf16.vlgmr.msra.gmra.mxu1 %vm613_vm1, %v836_v12 }
 0x5be   : > { %v1472_v15 = vpop.eup %1471 }
 0x5bf   : > { %v892_v17 = vmul.f32 %v1472_v15, %v1468_v59 }
 0x5c0   : > { %v834_v18 = vpop.f32.mrf.mxu0 }
 0x5c1   : > { %v893_v22 = vpack.c.bf16 %v892_v17, %v892_v17 }
 0x5c3   : > { %1316 = vmatmul.msk.bf16.vlgmr.msra.gmra.mxu3 %vm613_vm1, %v893_v22 }
 0x5cb   : > { %1326 = vmatmul.msk.bf16.vlgmr.msrb.gmra.mxu1 %vm560_vm0, %v976_v25 }
 0x638   : > { %v852_v35 = vpop.f32.mrf.mxu1 }
 0x639   : > { %v856_v37 = vadd.f32 %v852_v35, %v1814_v24 }
 0x640   : > { %v854_v40 = vpop.f32.mrf.mxu1 }
 0x646   : > { %v911_v42 = vpop.f32.mrf.mxu3 }
 0x647   : > { %v915_v43 = vpack.c.bf16 %v911_v42, %v911_v42 }
 0x648   : > { %v1009_v44 = vpop.f32.mrf.mxu1 }
 0x649   : > { %v1010_v45 = vadd.f32 %v1449_v41, %v1009_v44  ;;  %1317 = vmatmul.msk.bf16.vlgmr.msrb.gmra.mxu0 %vm613_vm1, %v915_v43 }
 0x64b   : > { %v1014_v46 = vmul.f32 0.044715, %v1010_v45  ;;  %v1013_v52 = vmul.f32 0.5, %v1010_v45 }
 0x64d   : > { %v1015_v24 = vmul.f32 %v1014_v46, %v1010_v45 }
 0x64e   : > { %v913_v47 = vpop.f32.mrf.mxu3 }
 0x64f   : > { %v1016_v48 = vmul.f32 %v1015_v24, %v1010_v45 }
 0x650   : > { %v1011_v49 = vpop.f32.mrf.mxu1 }
 0x651   : > { %v1017_v50 = vadd.f32 %v1016_v48, %v1010_v45 }
 0x653   : > { %v1018_v51 = vmul.f32 0.7978846, %v1017_v50 }
 0x655   : > { %1473 = vtanh.f32 %v1018_v51 }
 0x65b   : > { %v1474_v2 = vpop.eup %1473 }
 0x65c   : > { %v1020_v53 = vadd.f32 1.0, %v1474_v2 }
 0x65e   : > { %v1021_v54 = vmul.f32 %v1020_v53, %v1013_v52 }
 0x660   : > { %v1022_v55 = vpack.c.bf16 %v1021_v54, %v1021_v54 }
 0x662   : > { %1099 = vmatmul.bf16.vlgmr.msra.gmra.mxu2 %v1022_v55 }
 0x6c6   : > { %v931_v56 = vpop.f32.mrf.mxu0 }
 0x6c7   : > { %v935_v57 = vadd.f32 %v931_v56, %v856_v37 }
 0x6c9   : > { %936 = vst.msk [vmem:[%s523_s18] sm:$0xff] %vm560_vm0, %v935_v57 }
 0x6ce   : > { %v933_v27 = vpop.f32.mrf.mxu0 }
 0x6e5   : > { %v1100_v59 = vpop.f32.mrf.mxu2 }
 0x6e6   : > { %v1101_v19 = vadd.f32 %v1450_v58, %v1100_v59 }
 0x6e8   : > { %v1104_v60 = vadd.f32 %v1101_v19, %v975_v23 }
 0x6ea   : > { %v1107_v61 = vsel %vm560_vm0, %v1104_v60, 0.0 }
 0x6eb   : > { %1108 = vadd.xlane.f32.xlu2 %v1107_v61 }
 0x6ed   : > { %v1102_v62 = vpop.f32.mrf.mxu2 }
 0x75e   : > { %v1109_v63 = vpop.xlane.xlu2 %1108 }
 0x75f   : > { %v1110_v0 = vmul.f32 %v1109_v63, %v1818_v38 }
 0x761   : > { %v1111_v1 = vsub.f32 %v1104_v60, %v1110_v0 }
 0x763   : > { %v1112_v3 = vmul.f32 %v1111_v1, %v1111_v1 }
 0x765   : > { %v1113_v4 = vsel %vm560_vm0, %v1112_v3, 0.0 }
 0x766   : > { %1114 = vadd.xlane.f32.xlu2 %v1113_v4 }
 0x767   : > { %1504 = shalt.err (!%p1501_p5)
}
 0x768   : > { %1378 = dma.vmem_to_hbm [thread:$0]  (%p1717_p4), %s1173_s25, 128, %s1175_s29, %s1144_s27   ;;  %v1451_v12 = vld [vmem:[%s1973_s12] ss:$0 sm:$0xff] }
 0x769   : > { %s1155_s5 = scalar_lea.hbm %s1975_s14, %s1361_s22  ;;  %v1120_v14 = vmul.f32 %v1451_v12, %v1111_v1  ;;  %v1452_v15 = vld [vmem:[%s1974_s13] ss:$0 sm:$0xff]  ;;  %s2002_s27 = sshll.u32 %s1884_s0, 3 }
 0x76a   : > { %s516_s18 = scalar_lea.vmem [#allocation2], %s2002_s27  ;;  %s1159_s17 = sshll.u32 %s1155_s5, 4  ;;  %s1160_s17 = int_to_ptr.hbm [resolvable:$true] %s1159_s17 }
 0x76b   : > { %s1157_s26 = sshll.u32 %s516_s18, 4  ;;  %s1139_s21 = scalar_lea.sflag [#allocation3], %s1884_s0  ;;  %s1158_s26 = int_to_ptr.vmem [resolvable:$true] %s1157_s26 }
 0x76c   : > { %s1519_s22 = sshra.s32 %s1160_s17, 4  ;;  %s1525_s3 = scalar_lea.hbm %s1975_s14, 16  ;;  %s1520_s22 = int_to_ptr.hbm [resolvable:$true] %s1519_s22 }
 0x76d   : > { %s1521_s24 = scalar_lea.hbm %s1520_s22, 8  ;;  %p1526_p10 = scmp.lt.s32.totalorder %s1520_s22, %s1975_s14 }
 0x76e   : > { %p1522_p6 = scmp.ne.s32.totalorder %s1520_s22, %s1521_s24  ;;  %p1527_p11 = scmp.lt.s32.totalorder %s1525_s3, %s1521_s24 }
 0x770   : > { %p1523_p7 = pnand %p1522_p6, %p1717_p4  ;;  %p1528_p12 = por %p1527_p11, %p1526_p10 }
 0x772   : > { %p1524_p9 = pneg %p1523_p7 }
 0x774   : > { %p1529_p13 = pnand %p1528_p12, %p1524_p9 }
 0x7d9   : > { %v1115_v5 = vpop.xlane.xlu2 %1114 }
 0x7da   : > { %v1116_v6 = vmul.f32 %v1115_v5, %v1818_v38 }
 0x7dc   : > { %v1121_v7 = vadd.f32 1e-12, %v1116_v6 }
 0x7de   : > { %1475 = vrsqrt.f32 %v1121_v7  ;;  %vm1128_vm8 = vweird.f32 %v1121_v7 }
 0x7e4   : > { %v1476_v8 = vpop.eup %1475 }
 0x7e5   : > { %v1123_v9 = vmul.f32 %v1476_v8, %v1121_v7  ;;  %vm1129_vm7 = vweird.f32 %v1476_v8 }
 0x7e6   : > { %vm1130_vm9 = vmor %vm1128_vm8, %vm1129_vm7 }
 0x7e7   : > { %v1124_v10 = vmul.f32 %v1476_v8, %v1123_v9 }
 0x7e9   : > { %v1125_v11 = vmul.f32 0.5, %v1124_v10 }
 0x7eb   : > { %v1126_v13 = vsub.f32 1.5, %v1125_v11 }
 0x7ed   : > { %v1127_v38 = vmul.f32 %v1476_v8, %v1126_v13 }
 0x7ef   : > { %v1131_v16 = vsel %vm1130_vm9, %v1476_v8, %v1127_v38 }
 0x7f0   : > { %v1132_v17 = vmul.f32 %v1131_v16, %v1120_v14 }
 0x7f2   : > { %v1136_v18 = vadd.f32 %v1452_v15, %v1132_v17 }
 0x7f4   : > { %1137 = vst.msk [vmem:[%s516_s18] sm:$0xff] %vm560_vm0, %v1136_v18 }
 0x7f5   : > { %1532 = shalt.err (!%p1529_p13)
}
 0x7f6   : > { %1377 = dma.vmem_to_hbm [thread:$0]  (%p1717_p4), %s1158_s26, 128, %s1160_s17, %s1139_s21  }
 0x7f7 PF: > { %s2003_s0 = sld [smem:[#allocation8_spill]]  ;;  %p1388_p0 = scmp.ge.s32.totalorder %s1587_s23, 2 }
 0x7f9   : > { %p1382_p1 = pnand %p1388_p0, %p1724_p8 }
 0x7fb   : > { %p1383_p2 = pneg %p1382_p1 }
 0x7fd   : > { %s1186_s4 = sand.u32 1, %s2003_s0  }
 0x7fe   : > { %s1187_s5 = scalar_lea.sflag [#allocation3], %s1186_s4 }
 0x7ff   : > { %1558 = dma.done.wait (%p1383_p2), %s1187_s5, 128  }
 0x800   : > { %1560 = vsyncadd (%p1383_p2), %s1187_s5, 4294967168  ;;  %s1197_s6 = scalar_lea.sflag [#allocation5], %s1186_s4 }
 0x801   : > { %1562 = dma.done.wait (%p1383_p2), %s1197_s6, 128  }
 0x802   : > { %1564 = vsyncadd (%p1383_p2), %s1197_s6, 4294967168  ;;  %s32_s23 = sadd.s32 1, %s1587_s23   ;;  %s2004_s21 = sld [smem:[#allocation9_spill]] }
 0x803   : > { %p29_p3 = scmp.ge.s32.totalorder %s32_s23, 4   ;;  %s2005_s22 = sld [smem:[#allocation10_spill]] }
 0x804   : > { %s2006_s18 = smov %s1571_s19  ;;  %s2007_s19 = smov %s1575_s20 }
 0x805   : > { %s2008_s20 = smov %s1730_s16  ;;  %31 = sbr.rel (!%p29_p3) target bundleno = 15 (0xf), region = 132 }
 0x80a   :  { %1203 = vsyncpa [#allocation3], 1 }
 0x80b   :  { %1205 = vsyncpa [#allocation3 + $0x1], 1 }
 0x80c   :  { %1206 = vsyncpa [#allocation5], 1 }
 0x80d   :  { %1208 = vsyncpa [#allocation5 + $0x1], 1 }

</bundles_post_ra>
